<compile_context>
chip_gen: v7x
topology: tpu7x:2x2x1
jax: 0.10.0
libtpu: 0.0.40
codegen_flags: <defaults>
</compile_context>

<pallas_src>
import functools

import jax
import jax.numpy as jnp
from jax.experimental import pallas as pl
from jax.experimental.pallas import tpu as pltpu

GEM_P = 3.0       # conf['gemp']
GEM_EPS = 1e-6    # dirtorch GeM clamp eps
WHITEN_P = 0.25   # conf['whiten_params']['whitenp']
WHITEN_M = 1.0    # conf['whiten_params']['whitenm']


def _l2norm(x):
    return x * jax.lax.rsqrt(jnp.sum(x * x, axis=-1, keepdims=True) + 1e-12)


def _round_up(x, m):
    return ((x + m - 1) // m) * m


def gem_whiten_kernel(f_ref, fcw_ref, fcb_ref, mean_ref, comp_ref, scale_ref,
                      out_ref, acc_ref, *, s_total, tile_s, ragged):
    # f_ref:    (1, TS, C)   one spatial tile of one batch row (channels-last)
    # fcw_ref:  (C, Dfc)     FC whitening weight (already transposed)
    # fcb_ref:  (1, Dfc)     FC whitening bias
    # mean_ref: (1, Dfc)     PCA mean
    # comp_ref: (Dfc, Dpca)  PCA components transposed
    # scale_ref:(1, Dpca)    1 / (whitenm * explained_variance ** whitenp)
    # out_ref:  (1, 1, Dpca) output descriptor for this batch row
    # acc_ref:  (1, C)       f32 running sum of clamp(x, eps)^3 over S
    s_idx = pl.program_id(1)

    @pl.when(s_idx == 0)
    def _():
        acc_ref[...] = jnp.zeros_like(acc_ref)

    # --- streamed GeM accumulation: sum over spatial of clamp(x, eps)^3 ---
    x = f_ref[...].astype(jnp.float32)            # (1, TS, C)
    xc = jnp.maximum(x, GEM_EPS)
    cube = xc * xc * xc                           # VPU multiplies (no EUP pow)
    if ragged:
        # Zero out spatial rows past the true extent so the mean is unbiased.
        row = jax.lax.broadcasted_iota(jnp.int32, cube.shape, 1)
        cube = jnp.where(row + s_idx * tile_s < s_total, cube, 0.0)
    acc_ref[...] += jnp.sum(cube, axis=1)         # (1, C)

    # --- epilogue: finish GeM, whitening FC, PCA whitening, L2 norms ---
    @pl.when(s_idx == pl.num_programs(1) - 1)
    def _():
        # ^(1/p) only on the tiny (1, C) pooled tensor.
        pooled = (acc_ref[...] * (1.0 / s_total)) ** (1.0 / GEM_P)   # (1, C)
        pooled = _l2norm(pooled)

        d = jnp.dot(pooled, fcw_ref[...],
                    preferred_element_type=jnp.float32) + fcb_ref[...]   # (1, Dfc)
        d = _l2norm(d)

        w = jnp.dot(d - mean_ref[...], comp_ref[...],
                    preferred_element_type=jnp.float32)                  # (1, Dpca)
        w = w * scale_ref[...]
        w = _l2norm(w)

        out_ref[...] = w.reshape(out_ref.shape).astype(out_ref.dtype)


def gem_descriptor(feats, fc_w, fc_b, pca_mean, pca_comp_t, pca_inv_scale,
                   *, tile_s=None, vmem_limit_bytes=None):
    """feats: (N, S, C) feature maps (f32 or bf16) -> (N, Dpca) descriptors."""
    N, S, C = feats.shape
    Dfc = fc_w.shape[1]
    Dpca = pca_comp_t.shape[1]

    # Spatial tile: multiple of 16 (bf16 sublane packing), capped for VMEM.
    if tile_s is None:
        tile_s = min(512, _round_up(S, 16))
    tile_s = max(16, (tile_s // 16) * 16)
    s_pad = _round_up(S, tile_s)
    ragged = s_pad != S
    if ragged:
        feats = jnp.pad(feats, ((0, 0), (0, s_pad - S), (0, 0)))
    n_s_tiles = s_pad // tile_s

    kernel = functools.partial(gem_whiten_kernel,
                               s_total=S, tile_s=tile_s, ragged=ragged)

    grid_spec = pltpu.PrefetchScalarGridSpec(
        num_scalar_prefetch=0,
        grid=(N, n_s_tiles),
        in_specs=[
            # Streamed feature tiles (double-buffered by the pipeline).
            pl.BlockSpec((1, tile_s, C), lambda n, s: (n, s, 0)),
            # Whitening parameters: constant index_map -> fetched once, resident.
            pl.BlockSpec((C, Dfc), lambda n, s: (0, 0)),
            pl.BlockSpec((1, Dfc), lambda n, s: (0, 0)),
            pl.BlockSpec((1, Dfc), lambda n, s: (0, 0)),
            pl.BlockSpec((Dfc, Dpca), lambda n, s: (0, 0)),
            pl.BlockSpec((1, Dpca), lambda n, s: (0, 0)),
        ],
        out_specs=pl.BlockSpec((1, 1, Dpca), lambda n, s: (n, 0, 0)),
        scratch_shapes=[pltpu.VMEM((1, C), jnp.float32)],
    )

    itemsize = feats.dtype.itemsize
    cost = pl.CostEstimate(
        flops=3 * N * s_pad * C + N * C + 2 * N * C * Dfc + 2 * N * Dfc * Dpca,
        transcendentals=N * (C + 3),   # pow on pooled + three rsqrts per row
        bytes_accessed=(N * s_pad * C * itemsize
                        + fc_w.size * fc_w.dtype.itemsize
                        + pca_comp_t.size * pca_comp_t.dtype.itemsize
                        + (fc_b.size + pca_mean.size + pca_inv_scale.size) * 4
                        + N * Dpca * 4),
    )

    cp_kwargs = dict(dimension_semantics=("parallel", "arbitrary"))
    if vmem_limit_bytes is not None:
        cp_kwargs["vmem_limit_bytes"] = vmem_limit_bytes

    out = pl.pallas_call(
        kernel,
        out_shape=jax.ShapeDtypeStruct((N, 1, Dpca), jnp.float32),
        grid_spec=grid_spec,
        compiler_params=pltpu.CompilerParams(**cp_kwargs),
        cost_estimate=cost,
    )(feats, fc_w, fc_b, pca_mean, pca_comp_t, pca_inv_scale)
    return out.reshape(N, Dpca)


def reference(feats, fc_w, fc_b, pca_mean, pca_comp_t, pca_inv_scale):
    xc = jnp.maximum(feats.astype(jnp.float32), GEM_EPS)
    pooled = jnp.mean(xc ** GEM_P, axis=1) ** (1.0 / GEM_P)
    pooled = pooled / jnp.sqrt(jnp.sum(pooled**2, -1, keepdims=True) + 1e-12)
    d = pooled @ fc_w + fc_b
    d = d / jnp.sqrt(jnp.sum(d**2, -1, keepdims=True) + 1e-12)
    w = (d - pca_mean) @ pca_comp_t
    w = w * pca_inv_scale
    w = w / jnp.sqrt(jnp.sum(w**2, -1, keepdims=True) + 1e-12)
    return w


if __name__ == "__main__":
    # Small synthetic shapes consistent with the descriptor path:
    # batch=2, channels=32, spatial 8x8, FC whitening 32->32, PCA 32->16.
    N, C, H, W = 2, 32, 8, 8
    Dfc, Dpca = 32, 16

    key = jax.random.PRNGKey(0)
    k_img, k_fcw, k_fcb, k_mean, k_comp = jax.random.split(key, 5)

    # Pretend-backbone feature maps, NCHW -> NHWC -> (N, H*W, C).
    feats_nchw = jax.random.uniform(k_img, (N, C, H, W), jnp.float32)
    feats = jnp.transpose(feats_nchw, (0, 2, 3, 1)).reshape(N, H * W, C)

    # Deterministic synthetic parameters (checkpoint shapes, not values).
    fc_w = jax.random.normal(k_fcw, (C, Dfc), jnp.float32) * 0.05
    fc_b = jax.random.normal(k_fcb, (1, Dfc), jnp.float32) * 0.01
    pca_mean = jax.random.normal(k_mean, (1, Dfc), jnp.float32) * 0.02
    pca_comp_t = jax.random.normal(k_comp, (Dfc, Dpca), jnp.float32) * 0.1
    explained_var = jnp.linspace(2.0, 0.1, Dpca, dtype=jnp.float32)
    pca_inv_scale = (1.0 / (WHITEN_M * explained_var ** WHITEN_P)).reshape(1, Dpca)

    ref = reference(feats, fc_w, fc_b, pca_mean, pca_comp_t, pca_inv_scale)

    # 1) Evenly-tiled spatial streaming (2 tiles of 32 rows).
    out = gem_descriptor(feats, fc_w, fc_b, pca_mean, pca_comp_t, pca_inv_scale,
                         tile_s=32)
    out = jax.block_until_ready(out)
    assert out.shape == (N, Dpca)
    assert jnp.allclose(out, ref, atol=2e-5, rtol=2e-5), "mismatch (even tiles)"

    # 2) Ragged spatial tiling (tile=48 over S=64 -> padded + masked).
    out_r = gem_descriptor(feats, fc_w, fc_b, pca_mean, pca_comp_t,
                           pca_inv_scale, tile_s=48)
    out_r = jax.block_until_ready(out_r)
    assert jnp.allclose(out_r, ref, atol=2e-5, rtol=2e-5), "mismatch (ragged)"

    print("KERNEL_OK")
</pallas_src>

<mosaic_0001>
module attributes {stable_mosaic.version = 11 : i64} {
  func.func @gem_whiten_kernel(%arg0: i32, %arg1: i32, %arg2: memref<1x32x32xf32, #tpu.memory_space<vmem>>, %arg3: memref<32x32xf32, #tpu.memory_space<vmem>>, %arg4: memref<1x32xf32, #tpu.memory_space<vmem>>, %arg5: memref<1x32xf32, #tpu.memory_space<vmem>>, %arg6: memref<32x16xf32, #tpu.memory_space<vmem>>, %arg7: memref<1x16xf32, #tpu.memory_space<vmem>>, %arg8: memref<1x1x16xf32, #tpu.memory_space<vmem>>, %arg9: memref<1x32xf32, #tpu.memory_space<vmem>>) attributes {dimension_semantics = [#tpu.dimension_semantics<parallel>, #tpu.dimension_semantics<arbitrary>], iteration_bounds = array<i64: 2, 2>, scalar_prefetch = 0 : i64, scratch_operands = 1 : i64, tpu.core_type = #tpu.core_type<tc>, window_params = [{transform_indices = @transform_0, window_bounds = array<i64: 1, 32, 32>}, {pipeline_mode = #tpu.pipeline_mode<synchronous>, transform_indices = @transform_1, window_bounds = array<i64: 32, 32>}, {pipeline_mode = #tpu.pipeline_mode<synchronous>, transform_indices = @transform_2, window_bounds = array<i64: 1, 32>}, {pipeline_mode = #tpu.pipeline_mode<synchronous>, transform_indices = @transform_3, window_bounds = array<i64: 1, 32>}, {pipeline_mode = #tpu.pipeline_mode<synchronous>, transform_indices = @transform_4, window_bounds = array<i64: 32, 16>}, {pipeline_mode = #tpu.pipeline_mode<synchronous>, transform_indices = @transform_5, window_bounds = array<i64: 1, 16>}, {transform_indices = @transform_6, window_bounds = array<i64: 1, 1, 16>}]} {
    %c0_i32 = arith.constant 0 : i32
    %0 = arith.cmpi eq, %arg1, %c0_i32 : i32
    %1 = arith.extui %0 : i1 to i32
    %c0_i32_0 = arith.constant 0 : i32
    %2 = arith.cmpi ne, %1, %c0_i32_0 : i32
    scf.if %2 {
      %cst_9 = arith.constant 0.000000e+00 : f32
      %15 = vector.broadcast %cst_9 : f32 to vector<1x32xf32>
      %c0_10 = arith.constant 0 : index
      %c0_11 = arith.constant 0 : index
      %16 = vector.load %arg9[%c0_10, %c0_11] : memref<1x32xf32, #tpu.memory_space<vmem>>, vector<1x32xf32>
      tpu.vector_store %arg9[%c0_10, %c0_11], %15 {strides = array<i32>} : memref<1x32xf32, #tpu.memory_space<vmem>>, vector<1x32xf32>,
    } else {
    }
    %c0 = arith.constant 0 : index
    %c0_1 = arith.constant 0 : index
    %c0_2 = arith.constant 0 : index
    %3 = vector.load %arg2[%c0, %c0_1, %c0_2] : memref<1x32x32xf32, #tpu.memory_space<vmem>>, vector<1x32x32xf32>
    %cst = arith.constant 9.99999997E-7 : f32
    %4 = vector.broadcast %cst : f32 to vector<1x32x32xf32>
    %5 = arith.maximumf %3, %4 : vector<1x32x32xf32>
    %6 = arith.mulf %5, %5 : vector<1x32x32xf32>
    %7 = arith.mulf %6, %5 : vector<1x32x32xf32>
    %c0_3 = arith.constant 0 : index
    %c0_4 = arith.constant 0 : index
    %8 = vector.load %arg9[%c0_3, %c0_4] : memref<1x32xf32, #tpu.memory_space<vmem>>, vector<1x32xf32>
    %cst_5 = arith.constant dense<0.000000e+00> : vector<1x32xf32>
    %9 = vector.multi_reduction <add>, %7, %cst_5 [1] : vector<1x32x32xf32> to vector<1x32xf32>
    %10 = arith.addf %8, %9 : vector<1x32xf32>
    %c0_6 = arith.constant 0 : index
    %c0_7 = arith.constant 0 : index
    %11 = vector.load %arg9[%c0_6, %c0_7] : memref<1x32xf32, #tpu.memory_space<vmem>>, vector<1x32xf32>
    tpu.vector_store %arg9[%c0_6, %c0_7], %10 {strides = array<i32>} : memref<1x32xf32, #tpu.memory_space<vmem>>, vector<1x32xf32>,
    %c1_i32 = arith.constant 1 : i32
    %12 = arith.cmpi eq, %arg1, %c1_i32 : i32
    %13 = arith.extui %12 : i1 to i32
    %c0_i32_8 = arith.constant 0 : i32
    %14 = arith.cmpi ne, %13, %c0_i32_8 : i32
    scf.if %14 {
      %c0_9 = arith.constant 0 : index
      %c0_10 = arith.constant 0 : index
      %15 = vector.load %arg9[%c0_9, %c0_10] : memref<1x32xf32, #tpu.memory_space<vmem>>, vector<1x32xf32>
      %cst_11 = arith.constant 1.562500e-02 : f32
      %16 = vector.broadcast %cst_11 : f32 to vector<1x32xf32>
      %17 = arith.mulf %15, %16 : vector<1x32xf32>
      %cst_12 = arith.constant 0.333333343 : f32
      %18 = vector.broadcast %cst_12 : f32 to vector<1x32xf32>
      %19 = math.powf %17, %18 : vector<1x32xf32>
      %20 = arith.mulf %19, %19 : vector<1x32xf32>
      %cst_13 = arith.constant dense<0.000000e+00> : vector<1xf32>
      %21 = vector.multi_reduction <add>, %20, %cst_13 [1] : vector<1x32xf32> to vector<1xf32>
      %22 = vector.shape_cast %21 : vector<1xf32> to vector<1x1xf32>
      %cst_14 = arith.constant 9.99999996E-13 : f32
      %23 = vector.broadcast %cst_14 : f32 to vector<1x1xf32>
      %24 = arith.addf %22, %23 : vector<1x1xf32>
      %25 = math.rsqrt %24 : vector<1x1xf32>
      %26 = vector.broadcast %25 : vector<1x1xf32> to vector<1x32xf32>
      %27 = arith.mulf %19, %26 : vector<1x32xf32>
      %c0_15 = arith.constant 0 : index
      %c0_16 = arith.constant 0 : index
      %28 = vector.load %arg3[%c0_15, %c0_16] : memref<32x32xf32, #tpu.memory_space<vmem>>, vector<32x32xf32>
      %cst_17 = arith.constant dense<0.000000e+00> : vector<1x32xf32>
      %29 = tpu.matmul %27, %28, %cst_17 {dimension_numbers = #tpu.dot_dimension_numbers<[1], [0], [0], [1], [0, 0, 1, 1], [], []>} : vector<1x32xf32>, vector<32x32xf32>, vector<1x32xf32> -> vector<1x32xf32>
      %c0_18 = arith.constant 0 : index
      %c0_19 = arith.constant 0 : index
      %30 = vector.load %arg4[%c0_18, %c0_19] : memref<1x32xf32, #tpu.memory_space<vmem>>, vector<1x32xf32>
      %31 = arith.addf %29, %30 : vector<1x32xf32>
      %32 = arith.mulf %31, %31 : vector<1x32xf32>
      %cst_20 = arith.constant dense<0.000000e+00> : vector<1xf32>
      %33 = vector.multi_reduction <add>, %32, %cst_20 [1] : vector<1x32xf32> to vector<1xf32>
      %34 = vector.shape_cast %33 : vector<1xf32> to vector<1x1xf32>
      %cst_21 = arith.constant 9.99999996E-13 : f32
      %35 = vector.broadcast %cst_21 : f32 to vector<1x1xf32>
      %36 = arith.addf %34, %35 : vector<1x1xf32>
      %37 = math.rsqrt %36 : vector<1x1xf32>
      %38 = vector.broadcast %37 : vector<1x1xf32> to vector<1x32xf32>
      %39 = arith.mulf %31, %38 : vector<1x32xf32>
      %c0_22 = arith.constant 0 : index
      %c0_23 = arith.constant 0 : index
      %40 = vector.load %arg5[%c0_22, %c0_23] : memref<1x32xf32, #tpu.memory_space<vmem>>, vector<1x32xf32>
      %41 = arith.subf %39, %40 : vector<1x32xf32>
      %c0_24 = arith.constant 0 : index
      %c0_25 = arith.constant 0 : index
      %42 = vector.load %arg6[%c0_24, %c0_25] : memref<32x16xf32, #tpu.memory_space<vmem>>, vector<32x16xf32>
      %cst_26 = arith.constant dense<0.000000e+00> : vector<1x16xf32>
      %43 = tpu.matmul %41, %42, %cst_26 {dimension_numbers = #tpu.dot_dimension_numbers<[1], [0], [0], [1], [0, 0, 1, 1], [], []>} : vector<1x32xf32>, vector<32x16xf32>, vector<1x16xf32> -> vector<1x16xf32>
      %c0_27 = arith.constant 0 : index
      %c0_28 = arith.constant 0 : index
      %44 = vector.load %arg7[%c0_27, %c0_28] : memref<1x16xf32, #tpu.memory_space<vmem>>, vector<1x16xf32>
      %45 = arith.mulf %43, %44 : vector<1x16xf32>
      %46 = arith.mulf %45, %45 : vector<1x16xf32>
      %cst_29 = arith.constant dense<0.000000e+00> : vector<1xf32>
      %47 = vector.multi_reduction <add>, %46, %cst_29 [1] : vector<1x16xf32> to vector<1xf32>
      %48 = vector.shape_cast %47 : vector<1xf32> to vector<1x1xf32>
      %cst_30 = arith.constant 9.99999996E-13 : f32
      %49 = vector.broadcast %cst_30 : f32 to vector<1x1xf32>
      %50 = arith.addf %48, %49 : vector<1x1xf32>
      %51 = math.rsqrt %50 : vector<1x1xf32>
      %52 = vector.broadcast %51 : vector<1x1xf32> to vector<1x16xf32>
      %53 = arith.mulf %45, %52 : vector<1x16xf32>
      %54 = vector.shape_cast %53 : vector<1x16xf32> to vector<1x1x16xf32>
      %c0_31 = arith.constant 0 : index
      %c0_32 = arith.constant 0 : index
      %c0_33 = arith.constant 0 : index
      %55 = vector.load %arg8[%c0_31, %c0_32, %c0_33] : memref<1x1x16xf32, #tpu.memory_space<vmem>>, vector<1x1x16xf32>
      tpu.vector_store %arg8[%c0_31, %c0_32, %c0_33], %54 {strides = array<i32>} : memref<1x1x16xf32, #tpu.memory_space<vmem>>, vector<1x1x16xf32>,
    } else {
    }
    return
  }
  func.func @transform_0(%arg0: i32, %arg1: i32) -> (i32, i32, i32) {
    %c0_i32 = arith.constant 0 : i32
    %c0_i32_0 = arith.constant 0 : i32
    return %arg0, %arg1, %c0_i32 : i32, i32, i32
  }
  func.func @transform_1(%arg0: i32, %arg1: i32) -> (i32, i32) {
    %c0_i32 = arith.constant 0 : i32
    %c0_i32_0 = arith.constant 0 : i32
    %c0_i32_1 = arith.constant 0 : i32
    return %c0_i32, %c0_i32_0 : i32, i32
  }
  func.func @transform_2(%arg0: i32, %arg1: i32) -> (i32, i32) {
    %c0_i32 = arith.constant 0 : i32
    %c0_i32_0 = arith.constant 0 : i32
    %c0_i32_1 = arith.constant 0 : i32
    return %c0_i32, %c0_i32_0 : i32, i32
  }
  func.func @transform_3(%arg0: i32, %arg1: i32) -> (i32, i32) {
    %c0_i32 = arith.constant 0 : i32
    %c0_i32_0 = arith.constant 0 : i32
    %c0_i32_1 = arith.constant 0 : i32
    return %c0_i32, %c0_i32_0 : i32, i32
  }
  func.func @transform_4(%arg0: i32, %arg1: i32) -> (i32, i32) {
    %c0_i32 = arith.constant 0 : i32
    %c0_i32_0 = arith.constant 0 : i32
    %c0_i32_1 = arith.constant 0 : i32
    return %c0_i32, %c0_i32_0 : i32, i32
  }
  func.func @transform_5(%arg0: i32, %arg1: i32) -> (i32, i32) {
    %c0_i32 = arith.constant 0 : i32
    %c0_i32_0 = arith.constant 0 : i32
    %c0_i32_1 = arith.constant 0 : i32
    return %c0_i32, %c0_i32_0 : i32, i32
  }
  func.func @transform_6(%arg0: i32, %arg1: i32) -> (i32, i32, i32) {
    %c0_i32 = arith.constant 0 : i32
    %c0_i32_0 = arith.constant 0 : i32
    %c0_i32_1 = arith.constant 0 : i32
    return %arg0, %c0_i32, %c0_i32_0 : i32, i32, i32
  }
}

</mosaic_0001>

<bundles_post_ra>
// kernel: tpu_custom_call.1
= control target key start
LH: loop header
LB: loop body
LE: loop exit
PB: predicated region body
PF: predicated region fallthrough
CT: control target
= control target key end

     0   :  { %11 = vsyncpa [#allocation4], 0  ;;  %s1068_s0 = inlined_call_operand.vmem [shape: f32[2,64,32], index: 0, kind: input, shape index: {}]   ;;  %s1069_s1 = inlined_call_operand.vmem [shape: f32[32,32], index: 1, kind: input, shape index: {}]   ;;  %s1070_s2 = inlined_call_operand.vmem [shape: f32[1,32], index: 2, kind: input, shape index: {}]   ;;  %s1071_s3 = inlined_call_operand.vmem [shape: f32[1,32], index: 3, kind: input, shape index: {}]   ;;  %s1072_s4 = inlined_call_operand.vmem [shape: f32[32,16], index: 4, kind: input, shape index: {}]   ;;  %s1073_s5 = inlined_call_operand.vmem [shape: f32[1,16], index: 5, kind: input, shape index: {}]   ;;  %s1074_s6 = inlined_call_operand.hbm [shape: f32[2,1,16], index: 6, kind: output, shape index: {}]  }
   0x1   :  { %13 = vsyncpa [#allocation4 + $0x1], 0  ;;  %s889_s21 = smov 0   ;;  %s891_s22 = smov 0  }
   0x2   :  { %s893_s23 = smov 0   ;;  %s895_s24 = smov 0  }
   0x3   :  { %s897_s25 = smov 0   ;;  %s899_s26 = smov 0  }
   0x4   :  { %s901_s27 = smov 0   ;;  %s903_s28 = smov 0  }
   0x5 LB: > { %s591_s29 = sadd.s32 4294967295, %s847_s28   ;;  %s592_s30 = sadd.s32 4294967294, %s847_s28   ;;  %s847_s28 = sphi %s903_s28, %s19_s28   ;;  %s843_s27 = sphi %s901_s27, %s1083_s27   ;;  %s839_s26 = sphi %s899_s26, %s1082_s26   ;;  %s835_s25 = sphi %s897_s25, %s1081_s25   ;;  %s831_s24 = sphi %s895_s24, %s1080_s24   ;;  %s827_s23 = sphi %s893_s23, %s1079_s23   ;;  %s823_s22 = sphi %s891_s22, %s1078_s22   ;;  %s819_s21 = sphi %s889_s21, %s1077_s21  }
   0x6   : > { %s28_s7 = sadd.s32 1, %s839_s26  ;;  %s31_s8 = sadd.s32 1, %s843_s27 }
   0x7   : > { %p29_p0 = scmp.ge.s32.totalorder %s28_s7, 2  ;;  %p181_p1 = scmp.ne.s32.totalorder %s827_s23, %s823_s22 }
   0x8   : > { %p182_p2 = scmp.eq.s32.totalorder %s591_s29, 3  ;;  %p187_p4 = scmp.ne.s32.totalorder %s823_s22, %s819_s21 }
   0x9   : > { %s1085_s7 = smov (%p29_p0, %s28_s7), 0  ;;  %s1087_s8 = smov (!%p29_p0, %s31_s8), %s843_s27 }
   0xa   : > { %p938_p3 = por %p182_p2, %p181_p1  ;;  %p33_p5 = scmp.ge.s32.totalorder %s1087_s8, 2 }
   0xb   : > { %p188_p6 = scmp.eq.s32.totalorder %s592_s30, 3  ;;  %p595_p7 = scmp.ge.s32.totalorder %s847_s28, 1 }
   0xc   : > { %p234_p8 = scmp.lt.s32.totalorder %s847_s28, 5  ;;  %s1089_s8 = smov (%p33_p5, %s1087_s8), 0 }
   0xd   : > { %p948_p9 = por %p188_p6, %p187_p4  ;;  %s168_s11 = ssub.s32 %s843_s27, %s1089_s8 }
   0xe   : > { %p235_p10 = pnand %p595_p7, %p234_p8  ;;  %s171_s12 = sadd.s32 1, %s827_s23 }
   0xf   : > { %p169_p11 = scmp.eq.s32.totalorder %s168_s11, 0  ;;  %s265_s14 = sand.u32 (!%p235_p10), 1, %s823_s22  }
  0x10   : > { %238 = sbr.rel (%p235_p10) target bundleno = 1037 (0x40d), region = 44  ;;  %s596_s15 = sshll.u32 (!%p235_p10), %s831_s24, 2 }
  0x11   : > { %s956_s13 = scalar_select %p169_p11, %s827_s23, %s171_s12  }
  0x12   : > { %p268_p12 = scmp.lt.s32.totalorder (!%p235_p10), %s835_s25, 1  ;;  %p270_p13 = scmp.lt.s32.totalorder (!%p235_p10), %s596_s15, 7 }
  0x13   : > { %s967_s11 = scalar_lea.vmem (!%p235_p10), [#allocation3], %s265_s14  ;;  %p599_p0 = scmp.ne.s32.totalorder (!%p235_p10), %s831_s24, 0 }
  0x17   : > { %s269_s16 = scalar_select %p268_p12, %s835_s25, 1 }
  0x18   : > { %s1091_s15 = smov (!%p270_p13, %s596_s15), 7  ;;  %280 = sbr.rel (%p599_p0) target bundleno = 31 (0x1f), region = 48 }
  0x19   : > { %s597_s17 = sshll.u32 %s269_s16, 3  ;;  %vm281_vm0 = vcmask (!%p599_p0), 253952   ;;  %v849_v0 = vmov (!%p599_p0), 0.0  }
  0x1a   : > { %s273_s18 = sadd.s32 %s597_s17, %s1091_s15  ;;  %282 = vst.msk [vmem:[#allocation2] sm:$0x1] (!%p599_p0), %vm281_vm0, %v849_v0 }
  0x1b   : > { %s598_s19 = sshll.u32 %s273_s18, 3 }
  0x1c   : > { %s275_s30 = scalar_lea.vmem %s1068_s0, %s598_s19 }
  0x1f PF: > { %v283_v1 = vld [vmem:[%s275_s30] sm:$0xff]  ;;  %v284_v2 = vld [vmem:[%s275_s30 + $0x8] sm:$0xff]  ;;  %v285_v3 = vld [vmem:[%s275_s30 + $0x10] sm:$0xff]  ;;  %vm300_vm1 = vcmask 261120   ;;  %vm315_vm2 = vcmask 253952   ;;  %p600_p1 = scmp.ne.s32.totalorder %s831_s24, 1 }
  0x20   : > { %v286_v4 = vld [vmem:[%s275_s30 + $0x18] sm:$0xff]  ;;  %v287_v5 = vmax.f32 %v283_v1, 1e-06  ;;  %v288_v6 = vmax.f32 %v284_v2, 1e-06  ;;  %v331_v47 = vld [vmem:[%s1069_s1] sm:$0xff] (!%p600_p1) }
  0x21   : > { %v289_v7 = vmax.f32 %v285_v3, 1e-06  ;;  %v290_v8 = vmax.f32 %v286_v4, 1e-06  ;;  %v299_v29 = vld [vmem:[#allocation2] sm:$0x1] }
  0x22   : > { %v291_v9 = vmul.f32 %v287_v5, %v287_v5  ;;  %v292_v10 = vmul.f32 %v288_v6, %v288_v6  ;;  %v332_v48 = vld [vmem:[%s1069_s1 + $0x8] sm:$0xff] (!%p600_p1)  ;;  %v333_v49 = vld [vmem:[%s1069_s1 + $0x10] sm:$0xff] (!%p600_p1)  ;;  %v850_v50 = vmov (!%p600_p1), 0.0|0.0   ;;  %v334_v52 = vld [vmem:[%s1069_s1 + $0x18] sm:$0xff] (!%p600_p1)  ;;  %vm851_vm8 = vmmov (!%p600_p1), 0  }
  0x23   : > { %v293_v11 = vmul.f32 %v289_v7, %v289_v7  ;;  %v294_v12 = vmul.f32 %v290_v8, %v290_v8  ;;  %638 = vmatprep.subr.bf16.mxu0 (!%p600_p1), %v850_v50  ;;  %v639_v51 = vpack.c.bf16 (!%p600_p1), %v332_v48, %v331_v47  ;;  %v852_v53 = vmov (!%p600_p1), 0.0   ;;  %644 = vmatprep.subr.bf16.mxu1 (!%p600_p1), %v850_v50  ;;  %v335_v59 = vld [vmem:[%s1070_s2] sm:$0x1] (!%p600_p1)  ;;  %v419_v2 = vld [vmem:[%s1072_s4 + $0x8] sm:$0xff] (!%p600_p1)  ;;  %v420_v3 = vld [vmem:[%s1072_s4 + $0x10] sm:$0xff] (!%p600_p1) }
  0x24   : > { %v295_v13 = vmul.f32 %v291_v9, %v287_v5  ;;  %v296_v14 = vmul.f32 %v292_v10, %v288_v6  ;;  %624 = vmatprep.mubr.msk.f32.mxu0 (!%p600_p1), %vm851_vm8, %v852_v53  ;;  %635 = vmatprep.mubr.msk.f32.mxu1 (!%p600_p1), %vm851_vm8, %v852_v53  ;;  %v642_v54 = vpack.c.bf16 (!%p600_p1), %v334_v52, %v333_v49  ;;  %v418_v1 = vld [vmem:[%s1072_s4] sm:$0xff] (!%p600_p1)  ;;  %v421_v5 = vld [vmem:[%s1072_s4 + $0x18] sm:$0xff] (!%p600_p1)  ;;  %vm498_vm9 = vcmask (!%p600_p1), 122880  }
  0x25   : > { %v297_v15 = vmul.f32 %v293_v11, %v289_v7  ;;  %v298_v16 = vmul.f32 %v294_v12, %v290_v8  ;;  %640 = vmatpush3.bf16.msra.mxu0 (!%p600_p1), %v639_v51  ;;  %v645_v4 = vpack.c.bf16 (!%p600_p1), %v419_v2, %v418_v1  ;;  %v648_v6 = vpack.c.bf16 (!%p600_p1), %v421_v5, %v420_v3  ;;  %v416_v10 = vld [vmem:[%s1071_s3] sm:$0x1] (!%p600_p1) }
  0x26   : > { %v301_v17 = vsel %vm300_vm1, %v295_v13, 0.0  ;;  %v302_v18 = vsel %vm300_vm1, %v296_v14, 0.0  ;;  %641 = vmatprep.subr.bf16.mxu0 (!%p600_p1), %v850_v50  ;;  %v495_v13 = vld [vmem:[%s1073_s5] sm:$0x1] (!%p600_p1) }
  0x27   : > { %v303_v19 = vadd.f32 %v302_v18, %v301_v17  ;;  %v304_v20 = vsel %vm300_vm1, %v297_v15, 0.0  ;;  %v306_v21 = vsel %vm300_vm1, %v298_v16, 0.0  ;;  %646 = vmatpush3.bf16.msra.mxu1 (!%p600_p1), %v645_v4 }
  0x28   : > { %647 = vmatprep.subr.bf16.mxu1 (!%p600_p1), %v850_v50 }
  0x29   : > { %v305_v22 = vadd.f32 %v304_v20, %v303_v19  ;;  %643 = vmatpush3.bf16.msra.mxu0 (!%p600_p1), %v642_v54 }
  0x2b   : > { %v307_v23 = vadd.f32 %v306_v21, %v305_v22  ;;  %649 = vmatpush3.bf16.msra.mxu1 (!%p600_p1), %v648_v6 }
  0x2d   : > { %v308_v24 = vrot.slane %v307_v23, 4 }
  0x2f   : > { %v309_v25 = vadd.f32 %v308_v24, %v307_v23 }
  0x31   : > { %v310_v26 = vrot.slane %v309_v25, 2 }
  0x33   : > { %v311_v27 = vadd.f32 %v310_v26, %v309_v25 }
  0x35   : > { %v312_v28 = vrot.slane %v311_v27, 1  ;;  %320 = sbr.rel (%p600_p1) target bundleno = 1013 (0x3f5), region = 52 }
  0x37   : > { %v313_v30 = vadd.f32 %v312_v28, %v311_v27 }
  0x39   : > { %v314_v31 = vadd.f32 %v313_v30, %v299_v29 }
  0x3b   : > { %316 = vst.msk [vmem:[#allocation2] sm:$0x1] %vm315_vm2, %v314_v31 }
  0x42   : > { %v321_v32 = vld [vmem:[#allocation2] sm:$0x1] }
  0x43   : > { %v322_v33 = vmul.f32 0.015625, %v321_v32 }
  0x45   : > { %v652_v34 = vand.u32 2147483647, %v322_v33  ;;  %v656_v37 = vand.u32 2147483648, %v322_v33  ;;  %vm651_vm5 = vcmp.lt.f32.partialorder %v322_v33, 0.0  ;;  %vm650_vm6 = vcmp.eq.f32.partialorder %v322_v33, 0.0 }
  0x47   : > { %743 = vlog2.f32 %v652_v34  ;;  %vm660_vm3 = vweird.f32 %v652_v34  ;;  %vm662_vm4 = vcmp.eq.f32.partialorder %v652_v34, 0.0  ;;  %vm653_vm7 = vcmp.eq.f32.partialorder %v652_v34, inf }
  0x51   : > { %v744_v35 = vpop.eup %743 }
  0x52   : > { %v657_v36 = vmul.f32 0.33333334, %v744_v35 }
  0x54   : > { %745 = vpow2.f32 %v657_v36 }
  0x5e   : > { %v746_v38 = vpop.eup %745 }
  0x5f   : > { %v659_v39 = vor.u32 %v746_v38, %v656_v37 }
  0x61   : > { %v661_v40 = vsel %vm660_vm3, %v322_v33, %v659_v39 }
  0x62   : > { %v664_v41 = vsel %vm662_vm4, %v656_v37, %v661_v40 }
  0x63   : > { %v665_v42 = vsel %vm651_vm5, nan, %v664_v41 }
  0x64   : > { %v666_v43 = vsel %vm650_vm6, 0.0, %v665_v42 }
  0x65   : > { %v667_v44 = vsel %vm653_vm7, inf, %v666_v43 }
  0x66   : > { %v324_v45 = vmul.f32 %v667_v44, %v667_v44 }
  0x68   : > { %v325_v46 = vsel %vm315_vm2, %v324_v45, 0.0 }
  0x69   : > { %326 = vadd.xlane.f32.xlu0 %v325_v46 }
  0xf6   : > { %v327_v55 = vpop.xlane.xlu0 %326 }
  0xf7   : > { %v328_v56 = vadd.f32 1e-12, %v327_v55 }
  0xf9   : > { %747 = vrsqrt.f32 %v328_v56 }
 0x103   : > { %v748_v57 = vpop.eup %747 }
 0x104   : > { %v330_v58 = vmul.f32 %v748_v57, %v667_v44 }
 0x106   : > { %625 = vmatmul.mubr.msk.f32.vlgmr.msra.gmra.mrb[0].mxu0 %vm300_vm1, %v330_v58 }
 0x1d9   : > { %v405_v60 = vpop.f32.mrb[0].mxu0 }
 0x1da   : > { %v406_v61 = vadd.f32 %v405_v60, %v335_v59  ;;  %v626_v62 = vpop.f32.mrb[1].mxu0 }
 0x1dc   : > { %v409_v63 = vmul.f32 %v406_v61, %v406_v61 }
 0x1de   : > { %v410_v0 = vsel %vm315_vm2, %v409_v63, 0.0 }
 0x1df   : > { %411 = vadd.xlane.f32.xlu0 %v410_v0 }
 0x26c   : > { %v412_v7 = vpop.xlane.xlu0 %411 }
 0x26d   : > { %v413_v8 = vadd.f32 1e-12, %v412_v7 }
 0x26f   : > { %749 = vrsqrt.f32 %v413_v8 }
 0x279   : > { %v750_v9 = vpop.eup %749 }
 0x27a   : > { %v415_v11 = vmul.f32 %v750_v9, %v406_v61 }
 0x27c   : > { %v417_v12 = vsub.f32 %v415_v11, %v416_v10 }
 0x27e   : > { %636 = vmatmul.mubr.msk.f32.vlgmr.msra.gmra.mrb[0].mxu1 %vm300_vm1, %v417_v12 }
 0x351   : > { %v491_v14 = vpop.f32.mrb[0].mxu1 }
 0x352   : > { %v496_v15 = vmul.f32 %v495_v13, %v491_v14  ;;  %v637_v16 = vpop.f32.mrb[1].mxu1 }
 0x354   : > { %v497_v17 = vmul.f32 %v496_v15, %v496_v15 }
 0x356   : > { %v499_v18 = vsel %vm498_vm9, %v497_v17, 0.0 }
 0x357   : > { %500 = vadd.xlane.f32.xlu1 %v499_v18 }
 0x3e4   : > { %v501_v19 = vpop.xlane.xlu1 %500 }
 0x3e5   : > { %v502_v20 = vadd.f32 1e-12, %v501_v19 }
 0x3e7   : > { %751 = vrsqrt.f32 %v502_v20 }
 0x3f1   : > { %v752_v21 = vpop.eup %751 }
 0x3f2   : > { %v504_v22 = vmul.f32 %v752_v21, %v496_v15 }
 0x3f4   : > { %505 = vst.msk [vmem:[%s967_s11] sm:$0x1] %vm498_vm9, %v504_v22 }
 0x3f5 PF: > { %s603_s15 = sshll.u32 %s835_s25, 4  ;;  %s519_s19 = sshll.u32 %s967_s11, 4  ;;  %s520_s19 = int_to_ptr.vmem [resolvable:$true] %s519_s19 }
 0x3f6   : > { %s1018_s18 = scalar_lea.hbm %s1074_s6, %s603_s15  ;;  %s507_s20 = scalar_lea.sflag [#allocation4], %s265_s14 }
 0x3f7   : > { %s753_s29 = scalar_lea.vmem %s520_s19, 16  ;;  %s853_s30 = smov [#allocation3]  }
 0x3f8   : > { %p754_p2 = scmp.ne.s32.totalorder %s520_s19, %s753_s29  ;;  %s757_s24 = sshll.u32 %s853_s30, 4  ;;  %s758_s24 = int_to_ptr.vmem [resolvable:$false] %s757_s24 }
 0x3f9   : > { %s759_s12 = scalar_lea.vmem %s758_s24, 32  ;;  %p760_p6 = scmp.lt.s32.totalorder %s520_s19, %s758_s24 }
 0x3fa   : > { %p755_p4 = pnand %p754_p2, %p938_p3  ;;  %p761_p7 = scmp.lt.s32.totalorder %s759_s12, %s753_s29 }
 0x3fc   : > { %p756_p5 = pneg %p755_p4  ;;  %p762_p8 = por %p761_p7, %p760_p6 }
 0x3fe   : > { %p763_p10 = pnand %p762_p8, %p756_p5 }
 0x400   : > { %766 = shalt.err (!%p763_p10)
}
 0x401   : > { %s767_s25 = scalar_lea.hbm %s1018_s18, 16  ;;  %s771_s15 = scalar_lea.hbm %s1074_s6, 32 }
 0x402   : > { %p768_p11 = scmp.ne.s32.totalorder %s1018_s18, %s767_s25  ;;  %p772_p0 = scmp.lt.u32.totalorder %s1018_s18, %s1074_s6 }
 0x403   : > { %p773_p1 = scmp.lt.u32.totalorder %s771_s15, %s767_s25  ;;  %p775_p4 = scmp.lt.u32.totalorder %s767_s25, %s1018_s18 }
 0x404   : > { %p769_p12 = pnand %p768_p11, %p938_p3 }
 0x405   : > { %p774_p2 = por %p773_p1, %p772_p0 }
 0x406   : > { %p770_p13 = pneg %p769_p12 }
 0x407   : > { %p776_p5 = por %p775_p4, %p774_p2 }
 0x409   : > { %p777_p6 = pnand %p776_p5, %p770_p13 }
 0x40b   : > { %780 = shalt.err (!%p777_p6)
}
 0x40c   : > { %668 = dma.vmem_to_hbm [thread:$0]  (%p938_p3), %s520_s19, 16, %s1018_s18, %s507_s20  }
 0x40d PF: > { %p674_p7 = scmp.ge.s32.totalorder %s847_s28, 2  ;;  %s531_s29 = sand.u32 1, %s819_s21  }
 0x40e   : > { %s532_s30 = scalar_lea.sflag [#allocation4], %s531_s29 }
 0x40f   : > { %p671_p8 = pnand %p674_p7, %p948_p9 }
 0x411   : > { %814 = dma.done.wait (!%p671_p8), %s532_s30, 16  }
 0x412   : > { %816 = vsyncadd (!%p671_p8), %s532_s30, 4294967280  ;;  %s19_s28 = sadd.s32 1, %s847_s28   ;;  %s1077_s21 = smov %s823_s22 }
 0x413   : > { %p16_p10 = scmp.ge.s32.totalorder %s19_s28, 6   ;;  %s1078_s22 = smov %s827_s23 }
 0x414   : > { %s1079_s23 = smov %s956_s13  ;;  %s1080_s24 = smov %s839_s26 }
 0x415   : > { %s1081_s25 = smov %s843_s27  ;;  %s1082_s26 = smov %s1085_s7 }
 0x416   : > { %s1083_s27 = smov %s1089_s8  ;;  %18 = sbr.rel (!%p16_p10) target bundleno = 5 (0x5), region = 87 }
 0x41d   :  { %536 = vsyncpa [#allocation4], 1 }
 0x41e   :  { %538 = vsyncpa [#allocation4 + $0x1], 1 }

</bundles_post_ra>
